<compile_context>
chip_gen: v5e
topology: v5e:2x2
jax: 0.10.0
libtpu: 0.0.40
codegen_flags: <defaults>
</compile_context>

<pallas_src>
import jax
import jax.numpy as jnp
from jax.experimental import pallas as pl
from jax.experimental.pallas import tpu as pltpu


def _round_up(x, m):
    return (x + m - 1) // m * m


def _cdiv(a, b):
    return -(-a // b)


def _qnetwork_kernel(x_ref,
                     w1_ref, b1_ref,
                     w2_ref, b2_ref,
                     w3_ref, b3_ref,
                     w5_ref, b5_ref,
                     out_ref):
    # In-kernel cast of the f32 state to the parameter dtype (no-op for f32 params).
    x = x_ref[...].astype(w1_ref.dtype)
    # fc1 + relu  (MXU dot, f32 accumulate; elementwise epilogue stays f32 -> v5e-safe)
    h = jnp.dot(x, w1_ref[...], preferred_element_type=jnp.float32)
    h = jnp.maximum(h + b1_ref[...].astype(jnp.float32), 0.0)
    # fc2 + relu
    h = jnp.dot(h.astype(w2_ref.dtype), w2_ref[...], preferred_element_type=jnp.float32)
    h = jnp.maximum(h + b2_ref[...].astype(jnp.float32), 0.0)
    # fc3 + relu
    h = jnp.dot(h.astype(w3_ref.dtype), w3_ref[...], preferred_element_type=jnp.float32)
    h = jnp.maximum(h + b3_ref[...].astype(jnp.float32), 0.0)
    # fc5 (no activation); output width is the TRUE action_size -> narrow writeback.
    h = jnp.dot(h.astype(w5_ref.dtype), w5_ref[...], preferred_element_type=jnp.float32)
    out_ref[...] = (h + b5_ref[...].astype(jnp.float32)).astype(out_ref.dtype)


def init_qnetwork_params(state_size, action_size, seed=0):
    """Deterministic init mimicking PyTorch nn.Linear default (U[-1/sqrt(fan_in), +])."""
    key = jax.random.PRNGKey(seed)
    sizes = [(state_size, 160), (160, 80), (80, 80), (80, action_size)]
    names = ["1", "2", "3", "5"]
    params = {}
    for (fan_in, fan_out), name in zip(sizes, names):
        key, kw, kb = jax.random.split(key, 3)
        bound = 1.0 / jnp.sqrt(jnp.float32(fan_in))
        params[f"w{name}"] = jax.random.uniform(
            kw, (fan_in, fan_out), jnp.float32, -bound, bound)
        params[f"b{name}"] = jax.random.uniform(
            kb, (1, fan_out), jnp.float32, -bound, bound)
    return params


def pad_qnetwork_params(params, dtype=jnp.float32):
    """Zero-pad HIDDEN widths to lane (128) multiples; done once, outside the kernel.

    The final layer's output width is NOT padded (narrow output block), and the state
    feature dim is NOT padded.  Padded weight rows/cols and bias lanes are zero, so the
    padded hidden lanes stay exactly 0 through ReLU and contribute nothing downstream.
    Use dtype=jnp.bfloat16 on v6e/v7x to halve weight/activation bytes (MXU still
    accumulates in f32; the state stays f32 in HBM and is cast inside the kernel).
    """
    state_size = params["w1"].shape[0]
    action_size = params["w5"].shape[1]
    h1p = _round_up(160, 128)   # 256
    h2p = _round_up(80, 128)    # 128
    h3p = _round_up(80, 128)    # 128

    def pad2(a, rows, cols):
        r, c = a.shape
        return jnp.pad(a, ((0, rows - r), (0, cols - c))).astype(dtype)

    return {
        "w1": pad2(params["w1"], state_size, h1p), "b1": pad2(params["b1"], 1, h1p),
        "w2": pad2(params["w2"], h1p, h2p),        "b2": pad2(params["b2"], 1, h2p),
        "w3": pad2(params["w3"], h2p, h3p),        "b3": pad2(params["b3"], 1, h3p),
        "w5": pad2(params["w5"], h3p, action_size), "b5": pad2(params["b5"], 1, action_size),
    }


def _choose_batch_tile(B, tb_max):
    """Balanced, sublane-aligned batch tile; keep >=2 (>=4 for large B) grid steps."""
    B8 = _round_up(max(B, 1), 8)
    n_tiles = _cdiv(B8, tb_max)
    # v7x megacore: the batch axis is "parallel"; medium/large batches need multiple
    # grid steps so both TensorCores get work.  Tiny batches stay a single tile.
    if B8 >= 2048:
        n_tiles = max(n_tiles, 4)
    elif B8 >= 1024:
        n_tiles = max(n_tiles, 2)
    # Balanced tiles minimise zero-padding (e.g. B=300 -> tb=304, not Bp=512).
    return _round_up(_cdiv(B8, n_tiles), 8)


def qnetwork_forward(state, padded_params, action_size, *, tb_max=1024):
    """state: (B, state_size) f32 (kept f32 in HBM). padded_params: pad_qnetwork_params()."""
    p = padded_params
    B, S = state.shape
    AP = p["w5"].shape[1]          # == action_size (output width is kept narrow)

    tb = _choose_batch_tile(B, tb_max)
    Bp = _round_up(B, tb)
    if Bp != B:
        state = jnp.pad(state, ((0, Bp - B), (0, 0)))
    grid = (Bp // tb,)

    # Only the activations move with the grid index; weights/biases use constant block
    # indices -> DMA'd once, VMEM-resident for the whole call.
    x_spec = pl.BlockSpec((tb, S), lambda i: (i, 0))
    out_spec = pl.BlockSpec((tb, AP), lambda i: (i, 0))

    def const_spec(arr):
        return pl.BlockSpec(arr.shape, lambda i: (0, 0))

    in_specs = [
        x_spec,
        const_spec(p["w1"]), const_spec(p["b1"]),
        const_spec(p["w2"]), const_spec(p["b2"]),
        const_spec(p["w3"]), const_spec(p["b3"]),
        const_spec(p["w5"]), const_spec(p["b5"]),
    ]

    # Size scoped VMEM for the chosen tile (v5e's default is only 16 MiB); cap below
    # v7x's 64 MiB physical VMEM so the compiler keeps headroom.
    param_bytes = sum(int(v.size) * v.dtype.itemsize for v in p.values())
    h1p, h2p, h3p = p["w1"].shape[1], p["w2"].shape[1], p["w3"].shape[1]
    vmem_need = (2 * tb * S * state.dtype.itemsize          # double-buffered x tiles
                 + 2 * tb * AP * 4                          # double-buffered out tiles
                 + 2 * param_bytes                          # resident params
                 + tb * (h1p + h2p + h3p) * 4)              # f32 hidden activations
    vmem_limit = int(min(max(2 * vmem_need + (8 << 20), 32 << 20), 48 << 20))

    out = pl.pallas_call(
        _qnetwork_kernel,
        out_shape=jax.ShapeDtypeStruct((Bp, AP), jnp.float32),
        grid=grid,
        in_specs=in_specs,
        out_specs=out_spec,
        compiler_params=pltpu.CompilerParams(
            dimension_semantics=("parallel",),   # v7x megacore splits the batch tiles
            vmem_limit_bytes=vmem_limit),
    )(state,
      p["w1"], p["b1"], p["w2"], p["b2"],
      p["w3"], p["b3"], p["w5"], p["b5"])

    # Only batch padding (if any) needs slicing off; the lane dim is already narrow.
    if Bp != B or AP != action_size:
        out = out[:B, :action_size]
    return out


def _reference_forward(state, params):
    h = jnp.maximum(state @ params["w1"] + params["b1"], 0.0)
    h = jnp.maximum(h @ params["w2"] + params["b2"], 0.0)
    h = jnp.maximum(h @ params["w3"] + params["b3"], 0.0)
    return h @ params["w5"] + params["b5"]


if __name__ == "__main__":
    state_size = 8
    action_size = 4

    params = init_qnetwork_params(state_size, action_size, seed=0)
    key = jax.random.PRNGKey(0)
    k1, k2, k3 = jax.random.split(key, 3)

    # --- small batch, f32 params (exact path, single tile) -----------------------
    padded_f32 = pad_qnetwork_params(params, dtype=jnp.float32)
    state = jax.random.normal(k1, (2, state_size), jnp.float32)
    out = jax.block_until_ready(qnetwork_forward(state, padded_f32, action_size))
    ref = _reference_forward(state, params)
    assert out.shape == (2, action_size)
    assert jnp.allclose(out, ref, atol=1e-5, rtol=1e-5)

    # --- batch not a multiple of 8 (balanced tile + batch-pad path) --------------
    state_med = jax.random.normal(k2, (300, state_size), jnp.float32)
    out_med = jax.block_until_ready(
        qnetwork_forward(state_med, padded_f32, action_size))
    ref_med = _reference_forward(state_med, params)
    assert out_med.shape == (300, action_size)
    assert jnp.allclose(out_med, ref_med, atol=1e-5, rtol=1e-5)

    # --- large batch, bf16 params, multi-tile grid (>=4 steps for v7x megacore) --
    padded_bf16 = pad_qnetwork_params(params, dtype=jnp.bfloat16)
    state_big = jax.random.normal(k3, (2500, state_size), jnp.float32)
    out_big = jax.block_until_ready(
        qnetwork_forward(state_big, padded_bf16, action_size))
    ref_big = _reference_forward(state_big, params)
    assert out_big.shape == (2500, action_size)
    assert jnp.allclose(out_big, ref_big, atol=5e-2, rtol=5e-2)

    print("KERNEL_OK")
</pallas_src>

<mosaic_0001>
module attributes {stable_mosaic.version = 11 : i64} {
  func.func @_qnetwork_kernel(%arg0: i32, %arg1: memref<8x8xf32, #tpu.memory_space<vmem>>, %arg2: memref<8x256xf32, #tpu.memory_space<vmem>>, %arg3: memref<1x256xf32, #tpu.memory_space<vmem>>, %arg4: memref<256x128xf32, #tpu.memory_space<vmem>>, %arg5: memref<1x128xf32, #tpu.memory_space<vmem>>, %arg6: memref<128x128xf32, #tpu.memory_space<vmem>>, %arg7: memref<1x128xf32, #tpu.memory_space<vmem>>, %arg8: memref<128x4xf32, #tpu.memory_space<vmem>>, %arg9: memref<1x4xf32, #tpu.memory_space<vmem>>, %arg10: memref<8x4xf32, #tpu.memory_space<vmem>>) attributes {dimension_semantics = [#tpu.dimension_semantics<parallel>], iteration_bounds = array<i64: 1>, scalar_prefetch = 0 : i64, scratch_operands = 0 : i64, tpu.core_type = #tpu.core_type<tc>, window_params = [{transform_indices = @transform_0, window_bounds = array<i64: 8, 8>}, {pipeline_mode = #tpu.pipeline_mode<synchronous>, transform_indices = @transform_1, window_bounds = array<i64: 8, 256>}, {pipeline_mode = #tpu.pipeline_mode<synchronous>, transform_indices = @transform_2, window_bounds = array<i64: 1, 256>}, {pipeline_mode = #tpu.pipeline_mode<synchronous>, transform_indices = @transform_3, window_bounds = array<i64: 256, 128>}, {pipeline_mode = #tpu.pipeline_mode<synchronous>, transform_indices = @transform_4, window_bounds = array<i64: 1, 128>}, {pipeline_mode = #tpu.pipeline_mode<synchronous>, transform_indices = @transform_5, window_bounds = array<i64: 128, 128>}, {pipeline_mode = #tpu.pipeline_mode<synchronous>, transform_indices = @transform_6, window_bounds = array<i64: 1, 128>}, {pipeline_mode = #tpu.pipeline_mode<synchronous>, transform_indices = @transform_7, window_bounds = array<i64: 128, 4>}, {pipeline_mode = #tpu.pipeline_mode<synchronous>, transform_indices = @transform_8, window_bounds = array<i64: 1, 4>}, {transform_indices = @transform_9, window_bounds = array<i64: 8, 4>}]} {
    %c0 = arith.constant 0 : index
    %c0_0 = arith.constant 0 : index
    %0 = vector.load %arg1[%c0, %c0_0] : memref<8x8xf32, #tpu.memory_space<vmem>>, vector<8x8xf32>
    %c0_1 = arith.constant 0 : index
    %c0_2 = arith.constant 0 : index
    %1 = vector.load %arg2[%c0_1, %c0_2] : memref<8x256xf32, #tpu.memory_space<vmem>>, vector<8x256xf32>
    %cst = arith.constant dense<0.000000e+00> : vector<8x256xf32>
    %2 = tpu.matmul %0, %1, %cst {dimension_numbers = #tpu.dot_dimension_numbers<[1], [0], [0], [1], [0, 0, 1, 1], [], []>} : vector<8x8xf32>, vector<8x256xf32>, vector<8x256xf32> -> vector<8x256xf32>
    %c0_3 = arith.constant 0 : index
    %c0_4 = arith.constant 0 : index
    %3 = vector.load %arg3[%c0_3, %c0_4] : memref<1x256xf32, #tpu.memory_space<vmem>>, vector<1x256xf32>
    %4 = vector.broadcast %3 : vector<1x256xf32> to vector<8x256xf32>
    %5 = arith.addf %2, %4 : vector<8x256xf32>
    %cst_5 = arith.constant 0.000000e+00 : f32
    %6 = vector.broadcast %cst_5 : f32 to vector<8x256xf32>
    %7 = arith.maximumf %5, %6 : vector<8x256xf32>
    %c0_6 = arith.constant 0 : index
    %c0_7 = arith.constant 0 : index
    %8 = vector.load %arg4[%c0_6, %c0_7] : memref<256x128xf32, #tpu.memory_space<vmem>>, vector<256x128xf32>
    %cst_8 = arith.constant dense<0.000000e+00> : vector<8x128xf32>
    %9 = tpu.matmul %7, %8, %cst_8 {dimension_numbers = #tpu.dot_dimension_numbers<[1], [0], [0], [1], [0, 0, 1, 1], [], []>} : vector<8x256xf32>, vector<256x128xf32>, vector<8x128xf32> -> vector<8x128xf32>
    %c0_9 = arith.constant 0 : index
    %c0_10 = arith.constant 0 : index
    %10 = vector.load %arg5[%c0_9, %c0_10] : memref<1x128xf32, #tpu.memory_space<vmem>>, vector<1x128xf32>
    %11 = vector.broadcast %10 : vector<1x128xf32> to vector<8x128xf32>
    %12 = arith.addf %9, %11 : vector<8x128xf32>
    %cst_11 = arith.constant 0.000000e+00 : f32
    %13 = vector.broadcast %cst_11 : f32 to vector<8x128xf32>
    %14 = arith.maximumf %12, %13 : vector<8x128xf32>
    %c0_12 = arith.constant 0 : index
    %c0_13 = arith.constant 0 : index
    %15 = vector.load %arg6[%c0_12, %c0_13] : memref<128x128xf32, #tpu.memory_space<vmem>>, vector<128x128xf32>
    %cst_14 = arith.constant dense<0.000000e+00> : vector<8x128xf32>
    %16 = tpu.matmul %14, %15, %cst_14 {dimension_numbers = #tpu.dot_dimension_numbers<[1], [0], [0], [1], [0, 0, 1, 1], [], []>} : vector<8x128xf32>, vector<128x128xf32>, vector<8x128xf32> -> vector<8x128xf32>
    %c0_15 = arith.constant 0 : index
    %c0_16 = arith.constant 0 : index
    %17 = vector.load %arg7[%c0_15, %c0_16] : memref<1x128xf32, #tpu.memory_space<vmem>>, vector<1x128xf32>
    %18 = vector.broadcast %17 : vector<1x128xf32> to vector<8x128xf32>
    %19 = arith.addf %16, %18 : vector<8x128xf32>
    %cst_17 = arith.constant 0.000000e+00 : f32
    %20 = vector.broadcast %cst_17 : f32 to vector<8x128xf32>
    %21 = arith.maximumf %19, %20 : vector<8x128xf32>
    %c0_18 = arith.constant 0 : index
    %c0_19 = arith.constant 0 : index
    %22 = vector.load %arg8[%c0_18, %c0_19] : memref<128x4xf32, #tpu.memory_space<vmem>>, vector<128x4xf32>
    %cst_20 = arith.constant dense<0.000000e+00> : vector<8x4xf32>
    %23 = tpu.matmul %21, %22, %cst_20 {dimension_numbers = #tpu.dot_dimension_numbers<[1], [0], [0], [1], [0, 0, 1, 1], [], []>} : vector<8x128xf32>, vector<128x4xf32>, vector<8x4xf32> -> vector<8x4xf32>
    %c0_21 = arith.constant 0 : index
    %c0_22 = arith.constant 0 : index
    %24 = vector.load %arg9[%c0_21, %c0_22] : memref<1x4xf32, #tpu.memory_space<vmem>>, vector<1x4xf32>
    %25 = vector.broadcast %24 : vector<1x4xf32> to vector<8x4xf32>
    %26 = arith.addf %23, %25 : vector<8x4xf32>
    %c0_23 = arith.constant 0 : index
    %c0_24 = arith.constant 0 : index
    %27 = vector.load %arg10[%c0_23, %c0_24] : memref<8x4xf32, #tpu.memory_space<vmem>>, vector<8x4xf32>
    tpu.vector_store %arg10[%c0_23, %c0_24], %26 {strides = array<i32>} : memref<8x4xf32, #tpu.memory_space<vmem>>, vector<8x4xf32>,
    return
  }
  func.func @transform_0(%arg0: i32) -> (i32, i32) {
    %c0_i32 = arith.constant 0 : i32
    %c0_i32_0 = arith.constant 0 : i32
    return %arg0, %c0_i32 : i32, i32
  }
  func.func @transform_1(%arg0: i32) -> (i32, i32) {
    %c0_i32 = arith.constant 0 : i32
    %c0_i32_0 = arith.constant 0 : i32
    %c0_i32_1 = arith.constant 0 : i32
    return %c0_i32, %c0_i32_0 : i32, i32
  }
  func.func @transform_2(%arg0: i32) -> (i32, i32) {
    %c0_i32 = arith.constant 0 : i32
    %c0_i32_0 = arith.constant 0 : i32
    %c0_i32_1 = arith.constant 0 : i32
    return %c0_i32, %c0_i32_0 : i32, i32
  }
  func.func @transform_3(%arg0: i32) -> (i32, i32) {
    %c0_i32 = arith.constant 0 : i32
    %c0_i32_0 = arith.constant 0 : i32
    %c0_i32_1 = arith.constant 0 : i32
    return %c0_i32, %c0_i32_0 : i32, i32
  }
  func.func @transform_4(%arg0: i32) -> (i32, i32) {
    %c0_i32 = arith.constant 0 : i32
    %c0_i32_0 = arith.constant 0 : i32
    %c0_i32_1 = arith.constant 0 : i32
    return %c0_i32, %c0_i32_0 : i32, i32
  }
  func.func @transform_5(%arg0: i32) -> (i32, i32) {
    %c0_i32 = arith.constant 0 : i32
    %c0_i32_0 = arith.constant 0 : i32
    %c0_i32_1 = arith.constant 0 : i32
    return %c0_i32, %c0_i32_0 : i32, i32
  }
  func.func @transform_6(%arg0: i32) -> (i32, i32) {
    %c0_i32 = arith.constant 0 : i32
    %c0_i32_0 = arith.constant 0 : i32
    %c0_i32_1 = arith.constant 0 : i32
    return %c0_i32, %c0_i32_0 : i32, i32
  }
  func.func @transform_7(%arg0: i32) -> (i32, i32) {
    %c0_i32 = arith.constant 0 : i32
    %c0_i32_0 = arith.constant 0 : i32
    %c0_i32_1 = arith.constant 0 : i32
    return %c0_i32, %c0_i32_0 : i32, i32
  }
  func.func @transform_8(%arg0: i32) -> (i32, i32) {
    %c0_i32 = arith.constant 0 : i32
    %c0_i32_0 = arith.constant 0 : i32
    %c0_i32_1 = arith.constant 0 : i32
    return %c0_i32, %c0_i32_0 : i32, i32
  }
  func.func @transform_9(%arg0: i32) -> (i32, i32) {
    %c0_i32 = arith.constant 0 : i32
    %c0_i32_0 = arith.constant 0 : i32
    return %arg0, %c0_i32 : i32, i32
  }
}

</mosaic_0001>

<bundles_post_ra>
// kernel: tpu_custom_call.1
= control target key start
LH: loop header
LB: loop body
LE: loop exit
PB: predicated region body
PF: predicated region fallthrough
CT: control target
= control target key end

     0   :  { %14 = vsyncpa [#allocation3], 0  ;;  %s557_s0 = inlined_call_operand.hbm [shape: f32[8,8], index: 0, kind: input, shape index: {}]   ;;  %s558_s1 = inlined_call_operand.hbm [shape: f32[8,256], index: 1, kind: input, shape index: {}]   ;;  %s559_s2 = inlined_call_operand.vmem [shape: f32[1,256], index: 2, kind: input, shape index: {}]   ;;  %s560_s3 = inlined_call_operand.hbm [shape: f32[256,128], index: 3, kind: input, shape index: {}]   ;;  %s561_s4 = inlined_call_operand.vmem [shape: f32[1,128], index: 4, kind: input, shape index: {}]   ;;  %s562_s5 = inlined_call_operand.vmem [shape: f32[128,128], index: 5, kind: input, shape index: {}]   ;;  %s563_s6 = inlined_call_operand.vmem [shape: f32[1,128], index: 6, kind: input, shape index: {}]   ;;  %s564_s7 = inlined_call_operand.vmem [shape: f32[128,4], index: 7, kind: input, shape index: {}]   ;;  %s565_s8 = inlined_call_operand.vmem [shape: f32[1,4], index: 8, kind: input, shape index: {}]   ;;  %s566_s9 = inlined_call_operand.vmem [shape: f32[8,4], index: 9, kind: output, shape index: {}]  }
   0x1   :  { %15 = vsyncpa [#allocation5], 0  ;;  %s32_s11 = sshll.u32 %s558_s1, 4  ;;  %s382_s12 = smov [#allocation4]   ;;  %s33_s11 = int_to_ptr.hbm [resolvable:$true] %s32_s11 }
   0x2   :  { %s34_s13 = sshll.u32 %s382_s12, 4  ;;  %s21_s16 = sshll.u32 %s557_s0, 4  ;;  %s35_s13 = int_to_ptr.vmem [resolvable:$true] %s34_s13  ;;  %s22_s16 = int_to_ptr.hbm [resolvable:$true] %s21_s16 }
   0x3   :  { %37 = dma.hbm_to_vmem [thread:$0]  %s33_s11, 256, %s35_s13, [#allocation5]  }
   0x4   :  { %s383_s17 = smov [#allocation2]   ;;  %s44_s21 = sshll.u32 %s560_s3, 4  ;;  %s45_s21 = int_to_ptr.hbm [resolvable:$true] %s44_s21 }
   0x5   :  { %s23_s18 = sshll.u32 %s383_s17, 4  ;;  %s384_s1 = smov [#allocation6]   ;;  %s24_s18 = int_to_ptr.vmem [resolvable:$true] %s23_s18 }
   0x6   :  { %26 = dma.hbm_to_vmem [thread:$0]  %s22_s16, 128, %s24_s18, [#allocation3]  }
   0x7   :  { %s46_s22 = sshll.u32 %s384_s1, 4  ;;  %s385_s23 = smov 128   ;;  %s47_s22 = int_to_ptr.vmem [resolvable:$true] %s46_s22 }
   0x8   :  { %s386_s24 = smov 8  }
   0x9   :  { %52 = dma.hbm_to_vmem [thread:$0]  %s45_s21, 4096, %s47_s22, [#allocation5], %s385_s23, %s385_s23, %s386_s24  }
   0xa   :  { %378 = dma.done.wait [#allocation3], 128  }
   0xb   :  { %379 = vsyncadd [#allocation3], 4294967168 }
   0xc   :  { %380 = dma.done.wait [#allocation5], 4352  }
   0xd   :  { %381 = vsyncadd [#allocation5], 4294962944  ;;  %vm84_vm0 = vcmask 64512   ;;  %v76_v0 = vld [vmem:[#allocation4] sm:$0xff]  ;;  %v75_v1 = vld [vmem:[#allocation2] sm:$0xff]  ;;  %vm288_vm1 = vcmask 31744  }
   0xe   :  { %v77_v2 = vld [vmem:[#allocation4 + $0x8] sm:$0xff]  ;;  %103 = vmatpush.msra.mxu0 %v76_v0  ;;  %v144_v5 = vld [vmem:[#allocation6 + $0x70] sm:$0xff]  ;;  %v143_v7 = vld [vmem:[#allocation6 + $0x68] sm:$0xff] }
   0xf   :  { %123 = vmatpush.msra.mxu1 %v77_v2  ;;  %v145_v3 = vld [vmem:[#allocation6 + $0x78] sm:$0xff]  ;;  %296 = vmatmul.msk.f32.vlgmr.msra.gmra.mxu0 %vm84_vm0, %v75_v1  ;;  %v160_v6 = vld [vmem:[#allocation6 + $0xf0] sm:$0xff]  ;;  %v159_v8 = vld [vmem:[#allocation6 + $0xe8] sm:$0xff] }
  0x10   :  { %v161_v4 = vld [vmem:[#allocation6 + $0xf8] sm:$0xff]  ;;  %297 = vmatmul.msk.f32.vlgmr.msra.gmra.mxu1 %vm84_vm0, %v75_v1  ;;  %166 = vmatpush.msra.mxu2 %v145_v3  ;;  %v142_v9 = vld [vmem:[#allocation6 + $0x60] sm:$0xff]  ;;  %v140_v13 = vld [vmem:[#allocation6 + $0x50] sm:$0xff] }
  0x11   :  { %186 = vmatpush.msra.mxu3 %v161_v4  ;;  %v158_v10 = vld [vmem:[#allocation6 + $0xe0] sm:$0xff]  ;;  %v141_v11 = vld [vmem:[#allocation6 + $0x58] sm:$0xff]  ;;  %v156_v14 = vld [vmem:[#allocation6 + $0xd0] sm:$0xff] }
  0x12   :  { %167 = vmatpush.msra.mxu2 %v144_v5  ;;  %v157_v12 = vld [vmem:[#allocation6 + $0xd8] sm:$0xff]  ;;  %v139_v15 = vld [vmem:[#allocation6 + $0x48] sm:$0xff]  ;;  %v138_v17 = vld [vmem:[#allocation6 + $0x40] sm:$0xff] }
  0x13   :  { %187 = vmatpush.msra.mxu3 %v160_v6  ;;  %v155_v16 = vld [vmem:[#allocation6 + $0xc8] sm:$0xff]  ;;  %v154_v18 = vld [vmem:[#allocation6 + $0xc0] sm:$0xff]  ;;  %v137_v19 = vld [vmem:[#allocation6 + $0x38] sm:$0xff] }
  0x14   :  { %168 = vmatpush.msra.mxu2 %v143_v7  ;;  %v153_v20 = vld [vmem:[#allocation6 + $0xb8] sm:$0xff]  ;;  %v136_v21 = vld [vmem:[#allocation6 + $0x30] sm:$0xff]  ;;  %v135_v23 = vld [vmem:[#allocation6 + $0x28] sm:$0xff] }
  0x15   :  { %188 = vmatpush.msra.mxu3 %v159_v8  ;;  %v152_v22 = vld [vmem:[#allocation6 + $0xb0] sm:$0xff]  ;;  %v151_v24 = vld [vmem:[#allocation6 + $0xa8] sm:$0xff]  ;;  %v134_v25 = vld [vmem:[#allocation6 + $0x20] sm:$0xff] }
  0x16   :  { %169 = vmatpush.msra.mxu2 %v142_v9  ;;  %v150_v26 = vld [vmem:[#allocation6 + $0xa0] sm:$0xff]  ;;  %v133_v27 = vld [vmem:[#allocation6 + $0x18] sm:$0xff]  ;;  %v132_v28 = vld [vmem:[#allocation6 + $0x10] sm:$0xff] }
  0x17   :  { %189 = vmatpush.msra.mxu3 %v158_v10  ;;  %v149_v29 = vld [vmem:[#allocation6 + $0x98] sm:$0xff]  ;;  %v131_v30 = vld [vmem:[#allocation6 + $0x8] sm:$0xff]  ;;  %v148_v31 = vld [vmem:[#allocation6 + $0x90] sm:$0xff] }
  0x18   :  { %170 = vmatpush.msra.mxu2 %v141_v11  ;;  %v130_v32 = vld [vmem:[#allocation6] sm:$0xff]  ;;  %v147_v33 = vld [vmem:[#allocation6 + $0x88] sm:$0xff]  ;;  %v221_v36 = vld [vmem:[%s562_s5 + $0x70] sm:$0xff] }
  0x19   :  { %190 = vmatpush.msra.mxu3 %v157_v12  ;;  %v146_v34 = vld [vmem:[#allocation6 + $0x80] sm:$0xff]  ;;  %v220_v37 = vld [vmem:[%s562_s5 + $0x68] sm:$0xff]  ;;  %v219_v38 = vld [vmem:[%s562_s5 + $0x60] sm:$0xff] }
  0x1a   :  { %171 = vmatpush.msra.mxu2 %v140_v13  ;;  %v222_v35 = vld [vmem:[%s562_s5 + $0x78] sm:$0xff]  ;;  %v217_v40 = vld [vmem:[%s562_s5 + $0x50] sm:$0xff]  ;;  %v216_v41 = vld [vmem:[%s562_s5 + $0x48] sm:$0xff] }
  0x1b   :  { %191 = vmatpush.msra.mxu3 %v156_v14  ;;  %227 = vmatpush.msrb.mxu0 %v222_v35  ;;  %v218_v39 = vld [vmem:[%s562_s5 + $0x58] sm:$0xff]  ;;  %v215_v42 = vld [vmem:[%s562_s5 + $0x40] sm:$0xff]  ;;  %v213_v44 = vld [vmem:[%s562_s5 + $0x30] sm:$0xff] }
  0x1c   :  { %172 = vmatpush.msra.mxu2 %v139_v15  ;;  %v214_v43 = vld [vmem:[%s562_s5 + $0x38] sm:$0xff]  ;;  %v212_v45 = vld [vmem:[%s562_s5 + $0x28] sm:$0xff]  ;;  %v211_v46 = vld [vmem:[%s562_s5 + $0x20] sm:$0xff] }
  0x1d   :  { %192 = vmatpush.msra.mxu3 %v155_v16  ;;  %228 = vmatpush.msrb.mxu0 %v221_v36  ;;  %v78_v47 = vld [vmem:[%s559_s2] sm:$0x3]  ;;  %v210_v56 = vld [vmem:[%s562_s5 + $0x18] sm:$0xff]  ;;  %v209_v57 = vld [vmem:[%s562_s5 + $0x10] sm:$0xff] }
  0x1e   :  { %173 = vmatpush.msra.mxu2 %v138_v17  ;;  %v80_v48 = vperm.slane %v78_v47, 0  ;;  %v81_v49 = vperm.slane %v78_v47, 1  ;;  %v208_v58 = vld [vmem:[%s562_s5 + $0x8] sm:$0xff]  ;;  %v207_v59 = vld [vmem:[%s562_s5] sm:$0xff]  ;;  %v263_v60 = vld [vmem:[%s564_s7 + $0x78] sm:$0xff] }
  0x1f   :  { %193 = vmatpush.msra.mxu3 %v154_v18  ;;  %229 = vmatpush.msrb.mxu0 %v220_v37  ;;  %v262_v61 = vld [vmem:[%s564_s7 + $0x70] sm:$0xff]  ;;  %v261_v62 = vld [vmem:[%s564_s7 + $0x68] sm:$0xff]  ;;  %v260_v63 = vld [vmem:[%s564_s7 + $0x60] sm:$0xff] }
  0x20   :  { %174 = vmatpush.msra.mxu2 %v137_v19  ;;  %268 = vmatpush.msrb.mxu1 %v263_v60  ;;  %v259_v0 = vld [vmem:[%s564_s7 + $0x58] sm:$0xff]  ;;  %v258_v1 = vld [vmem:[%s564_s7 + $0x50] sm:$0xff]  ;;  %v257_v2 = vld [vmem:[%s564_s7 + $0x48] sm:$0xff] }
  0x21   :  { %194 = vmatpush.msra.mxu3 %v153_v20  ;;  %230 = vmatpush.msrb.mxu0 %v219_v38  ;;  %v256_v3 = vld [vmem:[%s564_s7 + $0x40] sm:$0xff]  ;;  %v255_v4 = vld [vmem:[%s564_s7 + $0x38] sm:$0xff]  ;;  %v254_v5 = vld [vmem:[%s564_s7 + $0x30] sm:$0xff] }
  0x22   :  { %175 = vmatpush.msra.mxu2 %v136_v21  ;;  %269 = vmatpush.msrb.mxu1 %v262_v61  ;;  %v253_v6 = vld [vmem:[%s564_s7 + $0x28] sm:$0xff]  ;;  %v252_v7 = vld [vmem:[%s564_s7 + $0x20] sm:$0xff]  ;;  %v251_v9 = vld [vmem:[%s564_s7 + $0x18] sm:$0xff] }
  0x23   :  { %195 = vmatpush.msra.mxu3 %v152_v22  ;;  %231 = vmatpush.msrb.mxu0 %v218_v39  ;;  %v303_v8 = vld [vmem:[%s561_s4] ss:$0 sm:$0xff]  ;;  %v250_v15 = vld [vmem:[%s564_s7 + $0x10] sm:$0xff]  ;;  %v249_v16 = vld [vmem:[%s564_s7 + $0x8] sm:$0xff] }
  0x24   :  { %176 = vmatpush.msra.mxu2 %v135_v23  ;;  %270 = vmatpush.msrb.mxu1 %v261_v62  ;;  %v248_v17 = vld [vmem:[%s564_s7] sm:$0xff] }
  0x25   :  { %196 = vmatpush.msra.mxu3 %v151_v24  ;;  %232 = vmatpush.msrb.mxu0 %v217_v40  ;;  %v304_v18 = vld [vmem:[%s563_s6] ss:$0 sm:$0xff] }
  0x26   :  { %177 = vmatpush.msra.mxu2 %v134_v25  ;;  %271 = vmatpush.msrb.mxu1 %v260_v63  ;;  %v305_v22 = vld [vmem:[%s565_s8] ss:$0 sm:$0xff] }
  0x27   :  { %197 = vmatpush.msra.mxu3 %v150_v26  ;;  %233 = vmatpush.msrb.mxu0 %v216_v41 }
  0x28   :  { %178 = vmatpush.msra.mxu2 %v133_v27  ;;  %272 = vmatpush.msrb.mxu1 %v259_v0 }
  0x29   :  { %198 = vmatpush.msra.mxu3 %v149_v29  ;;  %234 = vmatpush.msrb.mxu0 %v215_v42 }
  0x2a   :  { %179 = vmatpush.msra.mxu2 %v132_v28  ;;  %273 = vmatpush.msrb.mxu1 %v258_v1 }
  0x2b   :  { %199 = vmatpush.msra.mxu3 %v148_v31  ;;  %235 = vmatpush.msrb.mxu0 %v214_v43 }
  0x2c   :  { %180 = vmatpush.msra.mxu2 %v131_v30  ;;  %274 = vmatpush.msrb.mxu1 %v257_v2 }
  0x2d   :  { %200 = vmatpush.msra.mxu3 %v147_v33  ;;  %236 = vmatpush.msrb.mxu0 %v213_v44 }
  0x2e   :  { %181 = vmatpush.msra.mxu2 %v130_v32  ;;  %275 = vmatpush.msrb.mxu1 %v256_v3 }
  0x2f   :  { %201 = vmatpush.msra.mxu3 %v146_v34  ;;  %237 = vmatpush.msrb.mxu0 %v212_v45 }
  0x30   :  { %276 = vmatpush.msrb.mxu1 %v255_v4 }
  0x31   :  { %238 = vmatpush.msrb.mxu0 %v211_v46 }
  0x32   :  { %277 = vmatpush.msrb.mxu1 %v254_v5 }
  0x33   :  { %239 = vmatpush.msrb.mxu0 %v210_v56 }
  0x34   :  { %278 = vmatpush.msrb.mxu1 %v253_v6 }
  0x35   :  { %240 = vmatpush.msrb.mxu0 %v209_v57 }
  0x36   :  { %279 = vmatpush.msrb.mxu1 %v252_v7 }
  0x37   :  { %241 = vmatpush.msrb.mxu0 %v208_v58 }
  0x38   :  { %280 = vmatpush.msrb.mxu1 %v251_v9 }
  0x39   :  { %242 = vmatpush.msrb.mxu0 %v207_v59 }
  0x3a   :  { %281 = vmatpush.msrb.mxu1 %v250_v15 }
  0x3c   :  { %282 = vmatpush.msrb.mxu1 %v249_v16 }
  0x3e   :  { %283 = vmatpush.msrb.mxu1 %v248_v17 }
  0x8c   :  { %v105_v50 = vpop.f32.mrf.mxu0 }
  0x8d   :  { %v125_v51 = vpop.f32.mrf.mxu1  ;;  %v106_v52 = vadd.f32 %v105_v50, %v80_v48 }
  0x8e   :  { %v126_v53 = vadd.f32 %v125_v51, %v81_v49 }
  0x8f   :  { %v128_v54 = vmax.f32 %v106_v52, 0.0 }
  0x90   :  { %v129_v55 = vmax.f32 %v126_v53, 0.0 }
  0x91   :  { %182 = vmatmul.f32.vlgmr.msra.gmra.mxu2 %v128_v54 }
  0x92   :  { %202 = vmatmul.f32.vlgmr.msra.gmra.mxu3 %v129_v55 }
 0x114   :  { %v183_v10 = vpop.f32.mrf.mxu2 }
 0x115   :  { %v203_v11 = vpop.f32.mrf.mxu3  ;;  %v184_v12 = vadd.f32 %v303_v8, %v183_v10 }
 0x117   :  { %v204_v13 = vadd.f32 %v203_v11, %v184_v12 }
 0x119   :  { %v206_v14 = vmax.f32 %v204_v13, 0.0 }
 0x11b   :  { %243 = vmatmul.f32.vlgmr.msrb.gmra.mxu0 %v206_v14 }
 0x198   :  { %v244_v19 = vpop.f32.mrf.mxu0 }
 0x199   :  { %v245_v20 = vadd.f32 %v304_v18, %v244_v19 }
 0x19b   :  { %v247_v21 = vmax.f32 %v245_v20, 0.0 }
 0x19d   :  { %284 = vmatmul.f32.vlgmr.msrb.gmra.mxu1 %v247_v21 }
 0x21a   :  { %v285_v23 = vpop.f32.mrf.mxu1 }
 0x21b   :  { %v286_v24 = vadd.f32 %v305_v22, %v285_v23 }
 0x21d   :  { %289 = vst.msk [vmem:[%s566_s9] sm:$0xff] %vm288_vm1, %v286_v24 }
 0x21e   :  { %294 = vsyncpa [#allocation3], 1 }
 0x21f   :  { %295 = vsyncpa [#allocation5], 1 }

</bundles_post_ra>
